<compile_context>
chip_gen: v7x
topology: tpu7x:2x2x1
jax: 0.10.0
libtpu: 0.0.40
codegen_flags: <defaults>
</compile_context>

<pallas_src>
import functools
import math

import jax
import jax.numpy as jnp
from jax.experimental import pallas as pl
from jax.experimental.pallas import tpu as pltpu


def _bce_with_logits_mean_kernel(x_ref, y_ref, out_ref, *, n_valid, inv_n):
    """BCEWithLogitsLoss (mean), numerically stable:
         loss = max(x, 0) - x*y + log1p(exp(-|x|))
    Inputs are a lane-dense (1, N_padded) tile; padded lanes (if any) are
    masked out before the reduction.
    """
    x = x_ref[...].astype(jnp.float32)
    y = y_ref[...].astype(jnp.float32)
    per_elem = jnp.maximum(x, 0.0) - x * y + jnp.log1p(jnp.exp(-jnp.abs(x)))
    if n_valid != x.shape[-1]:  # static: only emit the mask when padding exists
        lane = jax.lax.broadcasted_iota(jnp.int32, per_elem.shape, dimension=1)
        per_elem = jnp.where(lane < n_valid, per_elem, 0.0)
    out_ref[0, 0] = jnp.sum(per_elem) * jnp.float32(inv_n)


def uptask_loss_test(cls_pred: jax.Array, cls_gt: jax.Array) -> jax.Array:
    """Pallas implementation of Uptask_Loss_Test.forward."""
    assert cls_pred.shape == cls_gt.shape
    total = math.prod(cls_pred.shape)
    padded = ((total + 127) // 128) * 128  # lane-dense: multiple of 128

    x = jnp.reshape(cls_pred.astype(jnp.float32), (1, total))
    y = jnp.reshape(cls_gt.astype(jnp.float32), (1, total))
    if padded != total:
        x = jnp.pad(x, ((0, 0), (0, padded - total)))
        y = jnp.pad(y, ((0, 0), (0, padded - total)))

    kernel = functools.partial(
        _bce_with_logits_mean_kernel, n_valid=total, inv_n=1.0 / float(total)
    )

    out = pl.pallas_call(
        kernel,
        out_shape=jax.ShapeDtypeStruct((1, 1), jnp.float32),
        # No grid: whole (1, padded) array is one VMEM block, scalar out in SMEM.
        in_specs=[
            pl.BlockSpec(memory_space=pltpu.MemorySpace.VMEM),
            pl.BlockSpec(memory_space=pltpu.MemorySpace.VMEM),
        ],
        out_specs=pl.BlockSpec(memory_space=pltpu.MemorySpace.SMEM),
    )(x, y)
    return out[0, 0]


if __name__ == "__main__":
    key = jax.random.PRNGKey(0)
    k1, k2 = jax.random.split(key)

    # Classification-head shaped inputs: (batch=8, num_classes=16).
    cls_pred = jax.random.normal(k1, (8, 16), dtype=jnp.float32)
    cls_gt = jax.random.bernoulli(k2, 0.5, (8, 16)).astype(jnp.float32)

    loss = uptask_loss_test(cls_pred, cls_gt)
    loss = jax.block_until_ready(loss)

    # Pure-JAX reference of BCEWithLogitsLoss (mean reduction).
    ref = jnp.mean(
        jnp.maximum(cls_pred, 0.0)
        - cls_pred * cls_gt
        + jnp.log1p(jnp.exp(-jnp.abs(cls_pred)))
    )
    assert jnp.allclose(loss, ref, atol=1e-5, rtol=1e-5), (loss, ref)

    print("KERNEL_OK")
</pallas_src>

<mosaic_0001>
module attributes {stable_mosaic.version = 11 : i64} {
  func.func @_bce_with_logits_mean_kernel(%arg0: memref<1x128xf32, #tpu.memory_space<vmem>>, %arg1: memref<1x128xf32, #tpu.memory_space<vmem>>, %arg2: memref<1x1xf32, #tpu.memory_space<smem>>) attributes {dimension_semantics = [], scalar_prefetch = 0 : i64, scratch_operands = 0 : i64, tpu.core_type = #tpu.core_type<tc>} {
    %c0 = arith.constant 0 : index
    %c0_0 = arith.constant 0 : index
    %0 = vector.load %arg0[%c0, %c0_0] : memref<1x128xf32, #tpu.memory_space<vmem>>, vector<1x128xf32>
    %c0_1 = arith.constant 0 : index
    %c0_2 = arith.constant 0 : index
    %1 = vector.load %arg1[%c0_1, %c0_2] : memref<1x128xf32, #tpu.memory_space<vmem>>, vector<1x128xf32>
    %cst = arith.constant 0.000000e+00 : f32
    %2 = vector.broadcast %cst : f32 to vector<1x128xf32>
    %3 = arith.maximumf %0, %2 : vector<1x128xf32>
    %4 = arith.mulf %0, %1 : vector<1x128xf32>
    %5 = arith.subf %3, %4 : vector<1x128xf32>
    %6 = math.absf %0 : vector<1x128xf32>
    %cst_3 = arith.constant 0.000000e+00 : f32
    %7 = vector.broadcast %cst_3 : f32 to vector<1x128xf32>
    %8 = arith.subf %7, %6 : vector<1x128xf32>
    %9 = math.exp %8 : vector<1x128xf32>
    %10 = math.log1p %9 : vector<1x128xf32>
    %11 = arith.addf %5, %10 : vector<1x128xf32>
    %12 = vector.shape_cast %11 : vector<1x128xf32> to vector<1x1x128xf32>
    %cst_4 = arith.constant dense<0.000000e+00> : vector<1xf32>
    %13 = vector.multi_reduction <add>, %12, %cst_4 [1, 2] : vector<1x1x128xf32> to vector<1xf32>
    %14 = vector.shape_cast %13 : vector<1xf32> to vector<1x1x1xf32>
    %15 = vector.extract %14[0, 0, 0] : f32 from vector<1x1x1xf32>
    %cst_5 = arith.constant 7.812500e-03 : f32
    %16 = arith.mulf %15, %cst_5 : f32
    %c0_6 = arith.constant 0 : index
    %c0_7 = arith.constant 0 : index
    %17 = memref.load %arg2[%c0_6, %c0_7] : memref<1x1xf32, #tpu.memory_space<smem>>
    memref.store %16, %arg2[%c0_6, %c0_7] : memref<1x1xf32, #tpu.memory_space<smem>>
    return
  }
}

</mosaic_0001>

<bundles_post_ra>
// kernel: tpu_custom_call.1
= control target key start
LH: loop header
LB: loop body
LE: loop exit
PB: predicated region body
PF: predicated region fallthrough
CT: control target
= control target key end

     0   :  { %7 = vsyncpa [#allocation3], 0  ;;  %s159_s0 = inlined_call_operand.hbm [shape: f32[1,128], index: 0, kind: input, shape index: {}]   ;;  %s160_s1 = inlined_call_operand.vmem [shape: f32[1,128], index: 1, kind: input, shape index: {}]   ;;  %s161_s2 = inlined_call_operand.hbm [shape: f32[1,1], index: 2, kind: output, shape index: {}]  }
   0x1   :  { %8 = vsyncpa [#allocation4], 0  ;;  %s115_s9 = smov [#allocation2]   ;;  %s79_s13 = scalar_lea.hbm %s159_s0, 16 }
   0x2   :  { %s15_s10 = sshll.u32 %s115_s9, 4  ;;  %p80_p0 = scmp.ne.s32.totalorder %s159_s0, %s79_s13  ;;  %s16_s10 = int_to_ptr.vmem [resolvable:$true] %s15_s10 }
   0x3   :  { %p83_p1 = scmp.lt.u32.totalorder %s79_s13, %s159_s0 }
   0x5   :  { %p85_p2 = pnand %p83_p1, %p80_p0 }
   0x7   :  { %88 = shalt.err (!%p85_p2)
}
   0x8   :  { %s89_s18 = scalar_lea.vmem %s16_s10, 16  ;;  %s93_s19 = scalar_lea.vmem %s16_s10, 32 }
   0x9   :  { %p90_p3 = scmp.ne.s32.totalorder %s16_s10, %s89_s18  ;;  %p94_p4 = scmp.lt.s32.totalorder %s16_s10, %s16_s10 }
   0xa   :  { %p95_p5 = scmp.lt.s32.totalorder %s93_s19, %s89_s18 }
   0xc   :  { %p96_p6 = por %p95_p5, %p94_p4 }
   0xe   :  { %p97_p7 = pnand %p96_p6, %p90_p3 }
  0x10   :  { %100 = shalt.err (!%p97_p7)
}
  0x11   :  { %18 = dma.hbm_to_vmem [thread:$0]  %s159_s0, 16, %s16_s10, [#allocation3]  }
  0x12   :  { %111 = dma.done.wait [#allocation3], 16  }
  0x13   :  { %112 = vsyncadd [#allocation3], 4294967280  ;;  %v24_v0 = vld [vmem:[#allocation2] sm:$0x1]  ;;  %vm43_vm1 = vcmask 1040384   ;;  %s101_s26 = scalar_lea.hbm %s161_s2, 16 }
  0x14   :  { %v29_v1 = vand.u32 2147483647, %v24_v0  ;;  %v25_v7 = vld [vmem:[%s160_s1] sm:$0x1]  ;;  %v26_v9 = vmax.f32 %v24_v0, 0.0  ;;  %p102_p8 = scmp.ne.s32.totalorder %s161_s2, %s101_s26  ;;  %p105_p9 = scmp.lt.u32.totalorder %s101_s26, %s161_s2 }
  0x15   :  { %v27_v10 = vmul.f32 %v25_v7, %v24_v0 }
  0x16   :  { %v30_v2 = vsub.f32 0.0, %v29_v1  ;;  %p107_p10 = pnand %p105_p9, %p102_p8 }
  0x17   :  { %v28_v14 = vsub.f32 %v26_v9, %v27_v10 }
  0x18   :  { %v31_v3 = vmul.f32 1.442695, %v30_v2 }
  0x1a   :  { %75 = vpow2.f32 %v31_v3 }
  0x24   :  { %v76_v4 = vpop.eup %75 }
  0x25   :  { %v33_v5 = vadd.f32 1.0, %v76_v4  ;;  %v36_v6 = vmul.f32 -0.5, %v76_v4  ;;  %v39_v11 = vand.u32 2147483647, %v76_v4 }
  0x27   :  { %77 = vlog2.f32 %v33_v5  ;;  %v37_v8 = vadd.f32 1.0, %v36_v6  ;;  %vm40_vm0 = vcmp.lt.f32.partialorder %v39_v11, 0.0004427343 }
  0x29   :  { %v38_v12 = vmul.f32 %v76_v4, %v37_v8 }
  0x31   :  { %v78_v13 = vpop.eup %77 }
  0x32   :  { %v35_v15 = vmul.f32 0.6931472, %v78_v13 }
  0x34   :  { %v41_v16 = vsel %vm40_vm0, %v38_v12, %v35_v15 }
  0x35   :  { %v42_v17 = vadd.f32 %v41_v16, %v28_v14 }
  0x37   :  { %v44_v18 = vsel %vm43_vm1, %v42_v17, 0.0 }
  0x38   :  { %45 = vadd.xlane.f32.xlu0 %v44_v18 }
  0xc5   :  { %v46_v19 = vpop.xlane.xlu0 %45 }
  0xc6   :  { %v47_v20 = vrot.slane %v46_v19, 4 }
  0xc8   :  { %v48_v21 = vadd.f32 %v47_v20, %v46_v19 }
  0xca   :  { %v49_v22 = vrot.slane %v48_v21, 2 }
  0xcc   :  { %v50_v23 = vadd.f32 %v49_v22, %v48_v21 }
  0xce   :  { %v51_v24 = vrot.slane %v50_v23, 1 }
  0xd0   :  { %v52_v25 = vadd.f32 %v51_v24, %v50_v23 }
  0xd2   :  { %71 = vpush %v52_v25 }
 0x103   :  { %s72_s0 = spop %71 }
 0x104   :  { %s54_s1 = smul.f32 0.0078125, %s72_s0 }
 0x106   :  { %56 = sst [smem:[#allocation5]] %s54_s1 }
 0x107   :  { %110 = shalt.err (!%p107_p10)
}
 0x108   :  { %s116_s3 = smov [#allocation5]  }
 0x109   :  { %64 = dma.smem_to_hbm %s116_s3, 16, %s161_s2, [#allocation4]  }
 0x10a   :  { %113 = dma.done.wait [#allocation4], 16  }
 0x10b   :  { %114 = vsyncadd [#allocation4], 4294967280 }
 0x10c   :  { %68 = sfence }
 0x10d   :  { %69 = vsyncpa [#allocation3], 1 }
 0x10e   :  { %70 = vsyncpa [#allocation4], 1 }

</bundles_post_ra>
